<compile_context>
chip_gen: v7x
topology: tpu7x:2x2x1
jax: 0.10.0
libtpu: 0.0.40
codegen_flags: <defaults>
</compile_context>

<pallas_src>
import math

import jax
import jax.numpy as jnp
from jax import lax
from jax.experimental import pallas as pl
from jax.experimental.pallas import tpu as pltpu

SQRT_HALF = math.sqrt(0.5)
NEG_LARGE = -1e30   # finite mask sentinel: exp() underflows to exactly 0.0


# ----------------------------------------------------------------------------
# Pallas kernel: one (block_b, T_tgt) slab per grid step.
# ----------------------------------------------------------------------------
def _attention_kernel(x_ref,        # (Bb, Tt, Cc)   decoder conv state (bf16)
                      tgt_ref,      # (Bb, Tt, E)    target embedding (bf16)
                      encx_ref,     # (Bb, Ts, E)    encoder_out_x / keys (bf16)
                      ency_ref,     # (Bb, Ts, E)    encoder_out_y / values (bf16)
                      mask_ref,     # (Bb, 1, Ts)    src mask (1 valid, 0 pad) f32
                      slen_ref,     # (Bb, 1, 1)     sqrt(src length) f32
                      w_in_ref,     # (Cc, E)        in_projection weight^T
                      b_in_ref,     # (1, E)         in_projection bias
                      w_out_ref,    # (E, Cc)        out_projection weight^T
                      b_out_ref,    # (1, Cc)        out_projection bias
                      out_ref,      # (Bb, Tt, Cc)   output (f32)
                      attn_ref):    # (Bb, Tt, Ts)   attention scores (f32)
    Bb, Tt, Cc = x_ref.shape
    Ts = encx_ref.shape[1]
    E = encx_ref.shape[2]

    x = x_ref[...]                                           # (Bb, Tt, Cc)
    residual = x

    # ---- in_projection: flatten batch*time so the MXU sees a tall M ----
    h = jnp.dot(x.reshape(Bb * Tt, Cc), w_in_ref[...],
                preferred_element_type=jnp.float32)          # (Bb*Tt, E) f32
    h = h + b_in_ref[...]
    h = (h.reshape(Bb, Tt, E) + tgt_ref[...]) * SQRT_HALF    # f32

    # ---- attention scores: contract the shared E axis directly (no .T) ----
    scores = lax.dot_general(
        h.astype(encx_ref.dtype), encx_ref[...],
        dimension_numbers=(((2,), (2,)), ((0,), (0,))),
        preferred_element_type=jnp.float32)                  # (Bb, Tt, Ts)

    # ---- masked softmax over T_src ----
    mask = mask_ref[...]                                     # (Bb, 1, Ts)
    scores = jnp.where(mask > 0.5, scores, NEG_LARGE)
    m = jnp.max(scores, axis=-1, keepdims=True)
    e = jnp.exp(scores - m)
    denom = jnp.sum(e, axis=-1, keepdims=True)
    p = e * pl.reciprocal(denom, approx=True)                # (Bb, Tt, Ts) f32
    attn_ref[...] = p.astype(attn_ref.dtype)

    # ---- context: attn @ encoder_out_y (batched) ----
    ctx = lax.dot_general(
        p.astype(ency_ref.dtype), ency_ref[...],
        dimension_numbers=(((2,), (1,)), ((0,), (0,))),
        preferred_element_type=jnp.float32)                  # (Bb, Tt, E)

    # ---- out_projection (flattened), sqrt(len) rescale on the small tile,
    #      residual add ----
    o = jnp.dot(ctx.reshape(Bb * Tt, E).astype(w_out_ref.dtype), w_out_ref[...],
                preferred_element_type=jnp.float32)          # (Bb*Tt, Cc) f32
    o = o.reshape(Bb, Tt, Cc) * slen_ref[...]                # scale matmul only
    o = o + b_out_ref[...]
    out_ref[...] = ((o + residual) * SQRT_HALF).astype(out_ref.dtype)


# ----------------------------------------------------------------------------
# Host wrapper.
# ----------------------------------------------------------------------------
def _round_up(n, m):
    return ((n + m - 1) // m) * m


def _pad_to(a, shape):
    pads = [(0, t - s) for s, t in zip(a.shape, shape)]
    if not any(hi for _, hi in pads):
        return a
    return jnp.pad(a, pads)


def _pick_block_b(batch, rows, target_rows=256):
    """Largest useful batch block: enough MXU rows per step, but keep >=2 grid
    steps when possible (v7x has 2 TensorCores)."""
    divisors = [d for d in range(1, batch + 1) if batch % d == 0]
    for d in divisors:                       # smallest d reaching the target
        if d * rows >= target_rows and batch // d >= 2:
            return d
    two_step = [d for d in divisors if batch // d >= 2]
    return max(two_step) if two_step else batch


def attention_layer(x, target_embedding, encoder_out_x, encoder_out_y,
                    src_mask, w_in, b_in, w_out, b_out,
                    *, compute_dtype=jnp.bfloat16, block_b=None):
    """x: (B, T_tgt, Cc); target_embedding: (B, T_tgt, E);
    encoder_out_{x,y}: (B, T_src, E); src_mask: (B, T_src) float 0/1.
    w_in: (E, Cc) [PyTorch (out,in)]; w_out: (Cc, E)."""
    B, T_tgt, Cc = x.shape
    _, T_src, E = encoder_out_x.shape
    cd = compute_dtype

    # Lane/sublane-friendly padded sizes (zero padding preserves the math).
    Tt = _round_up(T_tgt, 8)
    Ts = _round_up(T_src, 128)
    Ccp = _round_up(Cc, 128)
    Ep = _round_up(E, 128)

    if block_b is None:
        block_b = _pick_block_b(B, Tt)
    grid = (B // block_b,)

    # Host prep: cast to compute dtype (bf16 halves DMA; f32 accumulation in
    # kernel), transpose weights to (in, out), zero-pad to lane-dense tiles.
    xp = _pad_to(x.astype(cd), (B, Tt, Ccp))
    tgtp = _pad_to(target_embedding.astype(cd), (B, Tt, Ep))
    encxp = _pad_to(encoder_out_x.astype(cd), (B, Ts, Ep))
    encyp = _pad_to(encoder_out_y.astype(cd), (B, Ts, Ep))
    mask_f = jnp.asarray(src_mask, jnp.float32)
    maskp = _pad_to(mask_f, (B, Ts)).reshape(B, 1, Ts)
    slen = jnp.sqrt(jnp.sum(mask_f, axis=1)).reshape(B, 1, 1)      # sqrt(len)
    w_in_t = _pad_to(jnp.asarray(w_in, jnp.float32).T.astype(cd), (Ccp, Ep))
    w_out_t = _pad_to(jnp.asarray(w_out, jnp.float32).T.astype(cd), (Ep, Ccp))
    b_in2 = _pad_to(jnp.asarray(b_in, jnp.float32).reshape(1, E), (1, Ep))
    b_out2 = _pad_to(jnp.asarray(b_out, jnp.float32).reshape(1, Cc), (1, Ccp))

    # Rough per-step VMEM footprint (double-buffered blocks + f32 temporaries)
    # -> scoped-VMEM limit clamped to a 32..64 MiB window (fits v5e/v6e/v7x).
    isz = jnp.dtype(cd).itemsize
    blk = (block_b * Tt * Ccp + block_b * Tt * Ep + 2 * block_b * Ts * Ep) * isz
    blk += (block_b * Ts + block_b) * 4
    blk += (Ccp * Ep + Ep * Ccp) * isz + (Ep + Ccp) * 4
    blk += (block_b * Tt * Ccp + block_b * Tt * Ts) * 4            # outputs
    blk += 2 * block_b * Tt * (Ep + Ts) * 4                        # f32 temps
    vmem_limit = int(min(max(4 * blk, 32 * 1024 * 1024), 64 * 1024 * 1024))

    # NOTE: the constant weight/bias operands could be single-buffered
    # (pipeline_mode=pl.Buffered(1)) to halve their VMEM footprint; left at
    # the default double-buffering here since they are small after padding.
    out, attn = pl.pallas_call(
        _attention_kernel,
        out_shape=(
            jax.ShapeDtypeStruct((B, Tt, Ccp), jnp.float32),
            jax.ShapeDtypeStruct((B, Tt, Ts), jnp.float32),
        ),
        grid_spec=pltpu.PrefetchScalarGridSpec(
            num_scalar_prefetch=0,
            grid=grid,
            in_specs=[
                pl.BlockSpec((block_b, Tt, Ccp), lambda b: (b, 0, 0)),   # x
                pl.BlockSpec((block_b, Tt, Ep), lambda b: (b, 0, 0)),    # tgt emb
                pl.BlockSpec((block_b, Ts, Ep), lambda b: (b, 0, 0)),    # enc_x
                pl.BlockSpec((block_b, Ts, Ep), lambda b: (b, 0, 0)),    # enc_y
                pl.BlockSpec((block_b, 1, Ts), lambda b: (b, 0, 0)),     # mask
                pl.BlockSpec((block_b, 1, 1), lambda b: (b, 0, 0)),      # sqrt(len)
                pl.BlockSpec((Ccp, Ep), lambda b: (0, 0)),               # w_in^T
                pl.BlockSpec((1, Ep), lambda b: (0, 0)),                 # b_in
                pl.BlockSpec((Ep, Ccp), lambda b: (0, 0)),               # w_out^T
                pl.BlockSpec((1, Ccp), lambda b: (0, 0)),                # b_out
            ],
            out_specs=[
                pl.BlockSpec((block_b, Tt, Ccp), lambda b: (b, 0, 0)),
                pl.BlockSpec((block_b, Tt, Ts), lambda b: (b, 0, 0)),
            ],
        ),
        compiler_params=pltpu.CompilerParams(
            dimension_semantics=("parallel",),
            vmem_limit_bytes=vmem_limit,
        ),
    )(xp, tgtp, encxp, encyp, maskp, slen, w_in_t, b_in2, w_out_t, b_out2)

    # Strip padding back to the caller's shapes.
    return out[:, :T_tgt, :Cc], attn[:, :T_tgt, :T_src]


# ----------------------------------------------------------------------------
# Deterministic parameter construction (mirrors weight-normalized Linear).
# ----------------------------------------------------------------------------
def make_wn_linear(key, in_features, out_features, dropout=0.0):
    """Returns effective (weight, bias) of nn.utils.weight_norm(Linear)."""
    std = math.sqrt((1.0 - dropout) / in_features)
    v = std * jax.random.normal(key, (out_features, in_features), jnp.float32)
    norm = jnp.sqrt(jnp.sum(v * v, axis=1, keepdims=True))
    g = norm[:, 0]
    w = g[:, None] * v / norm                           # == v at init
    b = jnp.zeros((out_features,), jnp.float32)
    return w, b


def reference_forward(x, tgt, enc_x, enc_y, mask, w_in, b_in, w_out, b_out,
                      compute_dtype=jnp.bfloat16):
    """Pure-JAX reference matching the PyTorch forward, mirroring the kernel's
    compute-dtype choices (bf16 operands, f32 accumulation)."""
    cd = compute_dtype
    xc = x.astype(cd)
    w_in_t = jnp.asarray(w_in, jnp.float32).T.astype(cd)    # (Cc, E)
    w_out_t = jnp.asarray(w_out, jnp.float32).T.astype(cd)  # (E, Cc)

    residual = xc.astype(jnp.float32)
    h = jnp.einsum("btc,ce->bte", xc, w_in_t,
                   preferred_element_type=jnp.float32) + b_in
    h = (h + tgt.astype(cd).astype(jnp.float32)) * SQRT_HALF
    scores = jnp.einsum("bte,bse->bts", h.astype(cd), enc_x.astype(cd),
                        preferred_element_type=jnp.float32)
    scores = jnp.where(mask[:, None, :] > 0.5, scores, NEG_LARGE)
    p = jax.nn.softmax(scores, axis=-1)
    ctx = jnp.einsum("bts,bse->bte", p.astype(cd), enc_y.astype(cd),
                     preferred_element_type=jnp.float32)
    s = jnp.sum(mask, axis=1)[:, None, None]
    o = jnp.einsum("bte,ec->btc", ctx.astype(cd), w_out_t,
                   preferred_element_type=jnp.float32)
    o = o * jnp.sqrt(s) + b_out
    out = (o + residual) * SQRT_HALF
    return out, p


if __name__ == "__main__":
    B, T_TGT, T_SRC = 2, 8, 16
    CONV_CH, EMB = 8, 16

    key = jax.random.PRNGKey(0)
    k1, k2, k3, k4, k5, k6 = jax.random.split(key, 6)

    x = jax.random.normal(k1, (B, T_TGT, CONV_CH), jnp.float32)
    tgt = jax.random.normal(k2, (B, T_TGT, EMB), jnp.float32)
    enc_x = jax.random.normal(k3, (B, T_SRC, EMB), jnp.float32)
    enc_y = jax.random.normal(k4, (B, T_SRC, EMB), jnp.float32)

    # src_mask: 1 for valid positions, 0 for padding (per-batch lengths)
    lengths = jnp.array([T_SRC, 10], jnp.int32)
    pos = jnp.arange(T_SRC)[None, :]
    src_mask = (pos < lengths[:, None]).astype(jnp.float32)

    w_in, b_in = make_wn_linear(k5, CONV_CH, EMB)       # in_projection
    w_out, b_out = make_wn_linear(k6, EMB, CONV_CH)     # out_projection

    out, attn = attention_layer(x, tgt, enc_x, enc_y, src_mask,
                                w_in, b_in, w_out, b_out)
    jax.block_until_ready((out, attn))

    ref_out, ref_attn = reference_forward(x, tgt, enc_x, enc_y, src_mask,
                                          w_in, b_in, w_out, b_out)
    assert out.shape == ref_out.shape and attn.shape == ref_attn.shape
    # bf16 operands + approx reciprocal => compare at bf16-grade tolerance.
    assert jnp.allclose(out, ref_out, atol=2e-2, rtol=2e-2), \
        float(jnp.max(jnp.abs(out - ref_out)))
    assert jnp.allclose(attn, ref_attn, atol=2e-2, rtol=2e-2), \
        float(jnp.max(jnp.abs(attn - ref_attn)))

    print("KERNEL_OK")
</pallas_src>

<mosaic_0001>
module attributes {stable_mosaic.version = 11 : i64} {
  func.func @_attention_kernel(%arg0: i32, %arg1: memref<1x8x128xbf16, #tpu.memory_space<vmem>>, %arg2: memref<1x8x128xbf16, #tpu.memory_space<vmem>>, %arg3: memref<1x128x128xbf16, #tpu.memory_space<vmem>>, %arg4: memref<1x128x128xbf16, #tpu.memory_space<vmem>>, %arg5: memref<1x1x128xf32, #tpu.memory_space<vmem>>, %arg6: memref<1x1x1xf32, #tpu.memory_space<vmem>>, %arg7: memref<128x128xbf16, #tpu.memory_space<vmem>>, %arg8: memref<1x128xf32, #tpu.memory_space<vmem>>, %arg9: memref<128x128xbf16, #tpu.memory_space<vmem>>, %arg10: memref<1x128xf32, #tpu.memory_space<vmem>>, %arg11: memref<1x8x128xf32, #tpu.memory_space<vmem>>, %arg12: memref<1x8x128xf32, #tpu.memory_space<vmem>>) attributes {dimension_semantics = [#tpu.dimension_semantics<parallel>], iteration_bounds = array<i64: 2>, scalar_prefetch = 0 : i64, scratch_operands = 0 : i64, tpu.core_type = #tpu.core_type<tc>, window_params = [{transform_indices = @transform_0, window_bounds = array<i64: 1, 8, 128>}, {transform_indices = @transform_1, window_bounds = array<i64: 1, 8, 128>}, {transform_indices = @transform_2, window_bounds = array<i64: 1, 128, 128>}, {transform_indices = @transform_3, window_bounds = array<i64: 1, 128, 128>}, {transform_indices = @transform_4, window_bounds = array<i64: 1, 1, 128>}, {transform_indices = @transform_5, window_bounds = array<i64: 1, 1, 1>}, {pipeline_mode = #tpu.pipeline_mode<synchronous>, transform_indices = @transform_6, window_bounds = array<i64: 128, 128>}, {pipeline_mode = #tpu.pipeline_mode<synchronous>, transform_indices = @transform_7, window_bounds = array<i64: 1, 128>}, {pipeline_mode = #tpu.pipeline_mode<synchronous>, transform_indices = @transform_8, window_bounds = array<i64: 128, 128>}, {pipeline_mode = #tpu.pipeline_mode<synchronous>, transform_indices = @transform_9, window_bounds = array<i64: 1, 128>}, {transform_indices = @transform_10, window_bounds = array<i64: 1, 8, 128>}, {transform_indices = @transform_11, window_bounds = array<i64: 1, 8, 128>}]} {
    %c0 = arith.constant 0 : index
    %c0_0 = arith.constant 0 : index
    %c0_1 = arith.constant 0 : index
    %0 = vector.load %arg1[%c0, %c0_0, %c0_1] : memref<1x8x128xbf16, #tpu.memory_space<vmem>>, vector<1x8x128xbf16>
    %1 = vector.shape_cast %0 : vector<1x8x128xbf16> to vector<8x128xbf16>
    %c0_2 = arith.constant 0 : index
    %c0_3 = arith.constant 0 : index
    %2 = vector.load %arg7[%c0_2, %c0_3] : memref<128x128xbf16, #tpu.memory_space<vmem>>, vector<128x128xbf16>
    %cst = arith.constant dense<0.000000e+00> : vector<8x128xf32>
    %3 = tpu.matmul %1, %2, %cst {dimension_numbers = #tpu.dot_dimension_numbers<[1], [0], [0], [1], [0, 0, 1, 1], [], []>} : vector<8x128xbf16>, vector<128x128xbf16>, vector<8x128xf32> -> vector<8x128xf32>
    %c0_4 = arith.constant 0 : index
    %c0_5 = arith.constant 0 : index
    %4 = vector.load %arg8[%c0_4, %c0_5] : memref<1x128xf32, #tpu.memory_space<vmem>>, vector<1x128xf32>
    %5 = vector.broadcast %4 : vector<1x128xf32> to vector<8x128xf32>
    %6 = arith.addf %3, %5 : vector<8x128xf32>
    %7 = vector.shape_cast %6 : vector<8x128xf32> to vector<1x8x128xf32>
    %c0_6 = arith.constant 0 : index
    %c0_7 = arith.constant 0 : index
    %c0_8 = arith.constant 0 : index
    %8 = vector.load %arg2[%c0_6, %c0_7, %c0_8] : memref<1x8x128xbf16, #tpu.memory_space<vmem>>, vector<1x8x128xbf16>
    %9 = arith.extf %8 : vector<1x8x128xbf16> to vector<1x8x128xf32>
    %10 = arith.addf %7, %9 : vector<1x8x128xf32>
    %cst_9 = arith.constant 0.707106769 : f32
    %11 = vector.broadcast %cst_9 : f32 to vector<1x8x128xf32>
    %12 = arith.mulf %10, %11 : vector<1x8x128xf32>
    %13 = arith.truncf %12 : vector<1x8x128xf32> to vector<1x8x128xbf16>
    %c0_10 = arith.constant 0 : index
    %c0_11 = arith.constant 0 : index
    %c0_12 = arith.constant 0 : index
    %14 = vector.load %arg3[%c0_10, %c0_11, %c0_12] : memref<1x128x128xbf16, #tpu.memory_space<vmem>>, vector<1x128x128xbf16>
    %cst_13 = arith.constant dense<0.000000e+00> : vector<1x8x128xf32>
    %15 = tpu.matmul %13, %14, %cst_13 {dimension_numbers = #tpu.dot_dimension_numbers<[2], [2], [1], [1], [0, 0, 0, 1, 1, 1], [0], [0]>} : vector<1x8x128xbf16>, vector<1x128x128xbf16>, vector<1x8x128xf32> -> vector<1x8x128xf32>
    %c0_14 = arith.constant 0 : index
    %c0_15 = arith.constant 0 : index
    %c0_16 = arith.constant 0 : index
    %16 = vector.load %arg5[%c0_14, %c0_15, %c0_16] : memref<1x1x128xf32, #tpu.memory_space<vmem>>, vector<1x1x128xf32>
    %cst_17 = arith.constant 5.000000e-01 : f32
    %17 = vector.broadcast %cst_17 : f32 to vector<1x1x128xf32>
    %18 = arith.cmpf ogt, %16, %17 : vector<1x1x128xf32>
    %cst_18 = arith.constant -1.000000e+30 : f32
    %19 = vector.shape_cast %18 : vector<1x1x128xi1> to vector<1x1x128xi1>
    %20 = vector.broadcast %19 : vector<1x1x128xi1> to vector<1x8x128xi1>
    %21 = vector.broadcast %cst_18 : f32 to vector<1x8x128xf32>
    %22 = arith.select %20, %15, %21 : vector<1x8x128xi1>, vector<1x8x128xf32>
    %cst_19 = arith.constant dense<0xFF800000> : vector<1x8xf32>
    %23 = vector.multi_reduction <maximumf>, %22, %cst_19 [2] : vector<1x8x128xf32> to vector<1x8xf32>
    %24 = vector.shape_cast %23 : vector<1x8xf32> to vector<1x8x1xf32>
    %25 = vector.broadcast %24 : vector<1x8x1xf32> to vector<1x8x128xf32>
    %26 = arith.subf %22, %25 : vector<1x8x128xf32>
    %27 = math.exp %26 : vector<1x8x128xf32>
    %cst_20 = arith.constant dense<0.000000e+00> : vector<1x8xf32>
    %28 = vector.multi_reduction <add>, %27, %cst_20 [2] : vector<1x8x128xf32> to vector<1x8xf32>
    %29 = vector.shape_cast %28 : vector<1x8xf32> to vector<1x8x1xf32>
    %30 = tpu.reciprocal %29 {approx = true} : vector<1x8x1xf32> -> vector<1x8x1xf32>
    %31 = vector.broadcast %30 : vector<1x8x1xf32> to vector<1x8x128xf32>
    %32 = arith.mulf %27, %31 : vector<1x8x128xf32>
    %c0_21 = arith.constant 0 : index
    %c0_22 = arith.constant 0 : index
    %c0_23 = arith.constant 0 : index
    %33 = vector.load %arg12[%c0_21, %c0_22, %c0_23] : memref<1x8x128xf32, #tpu.memory_space<vmem>>, vector<1x8x128xf32>
    tpu.vector_store %arg12[%c0_21, %c0_22, %c0_23], %32 {strides = array<i32>} : memref<1x8x128xf32, #tpu.memory_space<vmem>>, vector<1x8x128xf32>,
    %34 = arith.truncf %32 : vector<1x8x128xf32> to vector<1x8x128xbf16>
    %c0_24 = arith.constant 0 : index
    %c0_25 = arith.constant 0 : index
    %c0_26 = arith.constant 0 : index
    %35 = vector.load %arg4[%c0_24, %c0_25, %c0_26] : memref<1x128x128xbf16, #tpu.memory_space<vmem>>, vector<1x128x128xbf16>
    %cst_27 = arith.constant dense<0.000000e+00> : vector<1x8x128xf32>
    %36 = tpu.matmul %34, %35, %cst_27 {dimension_numbers = #tpu.dot_dimension_numbers<[2], [1], [1], [2], [0, 0, 0, 1, 1, 2], [0], [0]>} : vector<1x8x128xbf16>, vector<1x128x128xbf16>, vector<1x8x128xf32> -> vector<1x8x128xf32>
    %37 = vector.shape_cast %36 : vector<1x8x128xf32> to vector<8x128xf32>
    %38 = arith.truncf %37 : vector<8x128xf32> to vector<8x128xbf16>
    %c0_28 = arith.constant 0 : index
    %c0_29 = arith.constant 0 : index
    %39 = vector.load %arg9[%c0_28, %c0_29] : memref<128x128xbf16, #tpu.memory_space<vmem>>, vector<128x128xbf16>
    %cst_30 = arith.constant dense<0.000000e+00> : vector<8x128xf32>
    %40 = tpu.matmul %38, %39, %cst_30 {dimension_numbers = #tpu.dot_dimension_numbers<[1], [0], [0], [1], [0, 0, 1, 1], [], []>} : vector<8x128xbf16>, vector<128x128xbf16>, vector<8x128xf32> -> vector<8x128xf32>
    %41 = vector.shape_cast %40 : vector<8x128xf32> to vector<1x8x128xf32>
    %c0_31 = arith.constant 0 : index
    %c0_32 = arith.constant 0 : index
    %c0_33 = arith.constant 0 : index
    %42 = vector.load %arg6[%c0_31, %c0_32, %c0_33] : memref<1x1x1xf32, #tpu.memory_space<vmem>>, vector<1x1x1xf32>
    %43 = vector.broadcast %42 : vector<1x1x1xf32> to vector<1x8x128xf32>
    %44 = arith.mulf %41, %43 : vector<1x8x128xf32>
    %c0_34 = arith.constant 0 : index
    %c0_35 = arith.constant 0 : index
    %45 = vector.load %arg10[%c0_34, %c0_35] : memref<1x128xf32, #tpu.memory_space<vmem>>, vector<1x128xf32>
    %46 = vector.shape_cast %45 : vector<1x128xf32> to vector<1x1x128xf32>
    %47 = vector.broadcast %46 : vector<1x1x128xf32> to vector<1x8x128xf32>
    %48 = arith.addf %44, %47 : vector<1x8x128xf32>
    %49 = arith.extf %0 : vector<1x8x128xbf16> to vector<1x8x128xf32>
    %50 = arith.addf %48, %49 : vector<1x8x128xf32>
    %cst_36 = arith.constant 0.707106769 : f32
    %51 = vector.broadcast %cst_36 : f32 to vector<1x8x128xf32>
    %52 = arith.mulf %50, %51 : vector<1x8x128xf32>
    %c0_37 = arith.constant 0 : index
    %c0_38 = arith.constant 0 : index
    %c0_39 = arith.constant 0 : index
    %53 = vector.load %arg11[%c0_37, %c0_38, %c0_39] : memref<1x8x128xf32, #tpu.memory_space<vmem>>, vector<1x8x128xf32>
    tpu.vector_store %arg11[%c0_37, %c0_38, %c0_39], %52 {strides = array<i32>} : memref<1x8x128xf32, #tpu.memory_space<vmem>>, vector<1x8x128xf32>,
    return
  }
  func.func @transform_0(%arg0: i32) -> (i32, i32, i32) {
    %c0_i32 = arith.constant 0 : i32
    %c0_i32_0 = arith.constant 0 : i32
    %c0_i32_1 = arith.constant 0 : i32
    return %arg0, %c0_i32, %c0_i32_0 : i32, i32, i32
  }
  func.func @transform_1(%arg0: i32) -> (i32, i32, i32) {
    %c0_i32 = arith.constant 0 : i32
    %c0_i32_0 = arith.constant 0 : i32
    %c0_i32_1 = arith.constant 0 : i32
    return %arg0, %c0_i32, %c0_i32_0 : i32, i32, i32
  }
  func.func @transform_2(%arg0: i32) -> (i32, i32, i32) {
    %c0_i32 = arith.constant 0 : i32
    %c0_i32_0 = arith.constant 0 : i32
    %c0_i32_1 = arith.constant 0 : i32
    return %arg0, %c0_i32, %c0_i32_0 : i32, i32, i32
  }
  func.func @transform_3(%arg0: i32) -> (i32, i32, i32) {
    %c0_i32 = arith.constant 0 : i32
    %c0_i32_0 = arith.constant 0 : i32
    %c0_i32_1 = arith.constant 0 : i32
    return %arg0, %c0_i32, %c0_i32_0 : i32, i32, i32
  }
  func.func @transform_4(%arg0: i32) -> (i32, i32, i32) {
    %c0_i32 = arith.constant 0 : i32
    %c0_i32_0 = arith.constant 0 : i32
    %c0_i32_1 = arith.constant 0 : i32
    return %arg0, %c0_i32, %c0_i32_0 : i32, i32, i32
  }
  func.func @transform_5(%arg0: i32) -> (i32, i32, i32) {
    %c0_i32 = arith.constant 0 : i32
    %c0_i32_0 = arith.constant 0 : i32
    %c0_i32_1 = arith.constant 0 : i32
    return %arg0, %c0_i32, %c0_i32_0 : i32, i32, i32
  }
  func.func @transform_6(%arg0: i32) -> (i32, i32) {
    %c0_i32 = arith.constant 0 : i32
    %c0_i32_0 = arith.constant 0 : i32
    %c0_i32_1 = arith.constant 0 : i32
    return %c0_i32, %c0_i32_0 : i32, i32
  }
  func.func @transform_7(%arg0: i32) -> (i32, i32) {
    %c0_i32 = arith.constant 0 : i32
    %c0_i32_0 = arith.constant 0 : i32
    %c0_i32_1 = arith.constant 0 : i32
    return %c0_i32, %c0_i32_0 : i32, i32
  }
  func.func @transform_8(%arg0: i32) -> (i32, i32) {
    %c0_i32 = arith.constant 0 : i32
    %c0_i32_0 = arith.constant 0 : i32
    %c0_i32_1 = arith.constant 0 : i32
    return %c0_i32, %c0_i32_0 : i32, i32
  }
  func.func @transform_9(%arg0: i32) -> (i32, i32) {
    %c0_i32 = arith.constant 0 : i32
    %c0_i32_0 = arith.constant 0 : i32
    %c0_i32_1 = arith.constant 0 : i32
    return %c0_i32, %c0_i32_0 : i32, i32
  }
  func.func @transform_10(%arg0: i32) -> (i32, i32, i32) {
    %c0_i32 = arith.constant 0 : i32
    %c0_i32_0 = arith.constant 0 : i32
    %c0_i32_1 = arith.constant 0 : i32
    return %arg0, %c0_i32, %c0_i32_0 : i32, i32, i32
  }
  func.func @transform_11(%arg0: i32) -> (i32, i32, i32) {
    %c0_i32 = arith.constant 0 : i32
    %c0_i32_0 = arith.constant 0 : i32
    %c0_i32_1 = arith.constant 0 : i32
    return %arg0, %c0_i32, %c0_i32_0 : i32, i32, i32
  }
}

</mosaic_0001>

<bundles_post_ra>
// kernel: tpu_custom_call.1
= control target key start
LH: loop header
LB: loop body
LE: loop exit
PB: predicated region body
PF: predicated region fallthrough
CT: control target
= control target key end

     0   :  { %s2465_s0 = inlined_call_operand.hbm [shape: bf16[2,8,128], index: 0, kind: input, shape index: {}]   ;;  %s2466_s1 = inlined_call_operand.hbm [shape: bf16[2,8,128], index: 1, kind: input, shape index: {}]   ;;  %s2467_s2 = inlined_call_operand.hbm [shape: bf16[2,128,128], index: 2, kind: input, shape index: {}]   ;;  %s2468_s3 = inlined_call_operand.hbm [shape: bf16[2,128,128], index: 3, kind: input, shape index: {}]   ;;  %s2469_s4 = inlined_call_operand.vmem [shape: f32[2,1,128], index: 4, kind: input, shape index: {}]   ;;  %s2470_s5 = inlined_call_operand.vmem [shape: f32[2,1,1], index: 5, kind: input, shape index: {}]   ;;  %s2471_s6 = inlined_call_operand.hbm [shape: bf16[128,128], index: 6, kind: input, shape index: {}]   ;;  %s2472_s7 = inlined_call_operand.vmem [shape: f32[1,128], index: 7, kind: input, shape index: {}]   ;;  %s2473_s8 = inlined_call_operand.hbm [shape: bf16[128,128], index: 8, kind: input, shape index: {}]   ;;  %s2474_s9 = inlined_call_operand.vmem [shape: f32[1,128], index: 9, kind: input, shape index: {}]   ;;  %s2475_s10 = inlined_call_operand.hbm [shape: f32[2,8,128], index: 10, kind: output, shape index: {0}]   ;;  %s2476_s11 = inlined_call_operand.hbm [shape: f32[2,8,128], index: 11, kind: output, shape index: {1}]  }
   0x1   :  { %2504 = sst [smem:[#allocation29_spill]] %s2466_s1 }
   0x2   :  { %2505 = sst [smem:[#allocation30_spill]] %s2470_s5 }
   0x3   :  { %2506 = sst [smem:[#allocation31_spill]] %s2471_s6 }
   0x4   :  { %2507 = sst [smem:[#allocation32_spill]] %s2474_s9 }
   0x5   :  { %2508 = sst [smem:[#allocation33_spill]] %s2475_s10 }
   0x6   :  { %2509 = sst [smem:[#allocation34_spill]] %s2476_s11 }
   0x7   :  { %17 = vsyncpa [#allocation3], 0 }
   0x8   :  { %19 = vsyncpa [#allocation3 + $0x1], 0 }
   0x9   :  { %20 = vsyncpa [#allocation6], 0 }
   0xa   :  { %22 = vsyncpa [#allocation6 + $0x1], 0 }
   0xb   :  { %23 = vsyncpa [#allocation9], 0 }
   0xc   :  { %25 = vsyncpa [#allocation9 + $0x1], 0 }
   0xd   :  { %26 = vsyncpa [#allocation12], 0 }
   0xe   :  { %27 = vsyncpa [#allocation4], 0 }
   0xf   :  { %29 = vsyncpa [#allocation4 + $0x1], 0 }
  0x10   :  { %30 = vsyncpa [#allocation15], 0 }
  0x11   :  { %32 = vsyncpa [#allocation15 + $0x1], 0  ;;  %s1973_s17 = smov 0   ;;  %s1975_s18 = smov 0  }
  0x12   :  { %s1977_s19 = smov 0   ;;  %s1979_s20 = smov 0  }
  0x13 LB: > { %2510 = sst [smem:[#allocation23_spill]] %s1886_s17  ;;  %s1994_s21 = sadd.s32 4294967295, %s1898_s20   ;;  %s1898_s20 = sphi %s1979_s20, %s2554_s20   ;;  %s1894_s19 = sphi %s1977_s19, %s2556_s19   ;;  %s1890_s18 = sphi %s1975_s18, %s2558_s18   ;;  %s1886_s17 = sphi %s1973_s17, %s2557_s17  }
  0x14   : > { %2511 = sst [smem:[#allocation24_spill]] %s1894_s19  ;;  %s1295_s22 = sadd.s32 4294967294, %s1898_s20  }
  0x15   : > { %p58_p0 = scmp.ne.s32.totalorder %s1890_s18, %s1886_s17  ;;  %p2478_p1 = scmp.eq.s32.totalorder %s1994_s21, 0 }
  0x16   : > { %p302_p3 = scmp.eq.s32.totalorder %s1295_s22, 1  ;;  %p1296_p5 = scmp.ge.s32.totalorder %s1898_s20, 1 }
  0x17   : > { %p2003_p4 = por %p2478_p1, %p58_p0  ;;  %p335_p7 = scmp.lt.s32.totalorder %s1898_s20, 3 }
  0x18   : > { %p2008_p6 = por %p302_p3, %p58_p0  ;;  %s1900_s26 = smov [#allocation10]  }
  0x19   : > { %s2512_s23 = scalar_select %p2003_p4, 1, 0 }
  0x1a   : > { %s2513_s24 = scalar_select %p2008_p6, 1, 0 }
  0x1b   : > { %p2013_p8 = pnand %p1296_p5, %p335_p7  ;;  %s347_s27 = sshll.u32 %s1900_s26, 4  ;;  %s2017_s27 = int_to_ptr.vmem [resolvable:$true] %s347_s27 }
  0x1c   : > { %2514 = sst [smem:[#allocation25_spill]] %s2513_s24  ;;  %s2029_s29 = sadd.s32 1, %s1898_s20  }
  0x1d   : > { %s2515_s25 = scalar_select %p2013_p8, 1, 0 }
  0x1e   : > { %p1498_p9 = pneg %p2013_p8  ;;  %2517 = sst [smem:[#allocation26_spill]] %s2029_s29 }
  0x1f   : > { %s45_s30 = sadd.s32 1, %s1894_s19  ;;  %s42_s12 = ssub.s32 %s1898_s20, %s2029_s29 }
  0x20   : > { %p2024_p11 = pnand %p1498_p9, %p2478_p1  ;;  %s2518_s6 = sld [smem:[#allocation31_spill]] }
  0x22   : > { %s2516_s28 = scalar_select %p2024_p11, 1, 0 }
  0x23   : > { %p2489_p13 = pneg %p2024_p11 }
  0x26   : > { %s1608_s15 = scalar_lea.hbm %s2518_s6, 1024 }
  0x27   : > { %p1609_p12 = scmp.ne.s32.totalorder %s2518_s6, %s1608_s15  ;;  %p1615_p5 = scmp.lt.u32.totalorder %s1608_s15, %s2518_s6 }
  0x29   : > { %p1611_p0 = pnand %p2489_p13, %p1609_p12 }
  0x2b   : > { %p1612_p3 = pneg %p1611_p0 }
  0x2d   : > { %p1617_p7 = pnand %p1615_p5, %p1612_p3 }
  0x2f   : > { %1620 = shalt.err (!%p1617_p7)
}
  0x30   : > { %s1621_s13 = scalar_lea.vmem %s2017_s27, 1024  ;;  %p1629_p2 = scmp.lt.s32.totalorder %s2017_s27, %s2017_s27 }
  0x31   : > { %p1622_p9 = scmp.ne.s32.totalorder %s2017_s27, %s1621_s13  ;;  %p1630_p12 = scmp.lt.s32.totalorder %s1621_s13, %s1621_s13 }
  0x33   : > { %p1624_p10 = pnand %p1622_p9, %p2489_p13  ;;  %p1631_p0 = por %p1630_p12, %p1629_p2 }
  0x35   : > { %p1625_p1 = pneg %p1624_p10 }
  0x37   : > { %p1632_p6 = pnand %p1631_p0, %p1625_p1 }
  0x39   : > { %1635 = shalt.err (!%p1632_p6)
}
  0x3a   : > { %s2479_s24 = smov 64   ;;  %s2481_s14 = smov 4  }
  0x3b   : > { %1501 = dma.hbm_to_vmem [thread:$0]  (!%p2024_p11), %s2518_s6, 1024, %s2017_s27, [#allocation9], %s2479_s24, %s2479_s24, %s2481_s14  }
  0x3c   : > { %p43_p1 = scmp.eq.s32.totalorder %s42_s12, 0  ;;  %p52_p2 = scmp.ne.s32.totalorder %s1894_s19, %s1890_s18 }
  0x3d   : > { %p53_p6 = scmp.eq.s32.totalorder %s1898_s20, 0  ;;  %p1527_p10 = scmp.lt.s32.totalorder %s1898_s20, 2 }
  0x3e   : > { %s2069_s22 = scalar_select %p43_p1, %s1894_s19, %s45_s30  }
  0x3f   : > { %p54_p3 = por %p53_p6, %p52_p2  ;;  %p2520_p5 = scmp.eq.s32.totalorder %s1994_s21, 1 }
  0x40   : > { %2519 = sst [smem:[#allocation27_spill]] %s2069_s22  ;;  %s2078_s13 = sand.u32 1, %s1894_s19  }
  0x41   : > { %p2073_p7 = por %p2520_p5, %p52_p2  ;;  %s2488_s15 = sshll.u32 %s1898_s20, 6 }
  0x42   : > { %s2487_s27 = sshll.u32 %s2078_s13, 2  ;;  %p2082_p9 = pnand %p1527_p10, %p54_p3 }
  0x43   : > { %s2521_s26 = scalar_select %p2073_p7, 1, 0 }
  0x44   : > { %s2523_s12 = scalar_select %p2082_p9, 1, 0 }
  0x45   : > { %2522 = sst [smem:[#allocation28_spill]] %s2521_s26  ;;  %s2491_s30 = sand.u32 1, %s1898_s20  }
  0x46   : > { %s2524_s1 = sld [smem:[#allocation29_spill]]  ;;  %s402_s6 = scalar_lea.vmem [#allocation5], %s2487_s27 }
  0x47   : > { %s409_s22 = sshll.u32 %s402_s6, 4  ;;  %s2101_s29 = scalar_lea.sflag [#allocation6], %s2491_s30  ;;  %s2096_s22 = int_to_ptr.vmem [resolvable:$true] %s409_s22 }
  0x48   : > { %p2107_p0 = pneg %p2082_p9 }
  0x4a   : > { %s2525_s24 = scalar_select %p2107_p0, 1, 0 }
  0x4c   : > { %s2092_s14 = scalar_lea.hbm %s2524_s1, %s2488_s15  ;;  %s1641_s6 = scalar_lea.hbm %s2524_s1, 128 }
  0x4d   : > { %s1636_s17 = scalar_lea.hbm %s2092_s14, 64  ;;  %p1642_p6 = scmp.lt.u32.totalorder %s2092_s14, %s2524_s1 }
  0x4e   : > { %p1637_p12 = scmp.ne.s32.totalorder %s2092_s14, %s1636_s17  ;;  %p1643_p10 = scmp.lt.u32.totalorder %s1641_s6, %s1636_s17 }
  0x4f   : > { %p1645_p5 = scmp.lt.u32.totalorder %s1636_s17, %s2092_s14 }
  0x50   : > { %p1639_p1 = pnand %p2107_p0, %p1637_p12  ;;  %p1644_p3 = por %p1643_p10, %p1642_p6 }
  0x52   : > { %p1640_p2 = pneg %p1639_p1  ;;  %p1646_p13 = por %p1645_p5, %p1644_p3 }
  0x54   : > { %p1647_p7 = pnand %p1646_p13, %p1640_p2 }
  0x56   : > { %1650 = shalt.err (!%p1647_p7)
}
  0x57   : > { %s1651_s30 = scalar_lea.vmem %s2096_s22, 64  ;;  %s1903_s27 = smov [#allocation5]  }
  0x58   : > { %p1652_p12 = scmp.ne.s32.totalorder %s2096_s22, %s1651_s30  ;;  %s1656_s16 = sshll.u32 %s1903_s27, 4  ;;  %s1657_s16 = int_to_ptr.vmem [resolvable:$false] %s1656_s16 }
  0x59   : > { %s1658_s19 = scalar_lea.vmem %s1657_s16, 128  ;;  %p1659_p8 = scmp.lt.s32.totalorder %s2096_s22, %s1657_s16 }
  0x5a   : > { %p1654_p1 = pnand %p1652_p12, %p2107_p0  ;;  %p1660_p11 = scmp.lt.s32.totalorder %s1658_s19, %s1651_s30 }
  0x5c   : > { %p1655_p4 = pneg %p1654_p1  ;;  %p1661_p6 = por %p1660_p11, %p1659_p8 }
  0x5e   : > { %p1662_p10 = pnand %p1661_p6, %p1655_p4 }
  0x60   : > { %1665 = shalt.err (!%p1662_p10)
}
  0x61   : > { %1511 = dma.hbm_to_vmem [thread:$0]  (!%p2082_p9), %s2092_s14, 64, %s2096_s22, %s2101_s29  }
  0x62   : > { %s2526_s17 = sshll.u32 %s2078_s13, 6  ;;  %s1904_s19 = smov [#allocation11]  }
  0x63   : > { %s420_s15 = scalar_lea.vmem [#allocation7], %s2526_s17  ;;  %s2527_s27 = smov %s2526_s17 }
  0x64   : > { %s427_s6 = sshll.u32 %s420_s15, 4  ;;  %s441_s16 = scalar_lea.vmem [#allocation8], %s2527_s27  ;;  %s2133_s6 = int_to_ptr.vmem [resolvable:$true] %s427_s6 }
  0x65   : > { %s448_s30 = sshll.u32 %s441_s16, 4  ;;  %s363_s1 = sshll.u32 %s1904_s19, 4  ;;  %s2137_s30 = int_to_ptr.vmem [resolvable:$true] %s448_s30  ;;  %s364_s1 = int_to_ptr.vmem [resolvable:$true] %s363_s1 }
  0x66   : > { %s1666_s11 = scalar_lea.hbm %s2473_s8, 1024  ;;  %p2528_p8 = scmp.ne.s32.totalorder %s2516_s28, 0 }
  0x67   : > { %p1667_p4 = scmp.ne.s32.totalorder %s2473_s8, %s1666_s11  ;;  %p1673_p2 = scmp.lt.u32.totalorder %s1666_s11, %s2473_s8 }
  0x68   : > { %p2529_p11 = pneg %p2528_p8 }
  0x6a   : > { %p1669_p13 = pnand %p1667_p4, %p2529_p11 }
  0x6c   : > { %p1670_p7 = pneg %p1669_p13 }
  0x6e   : > { %p1675_p3 = pnand %p1673_p2, %p1670_p7 }
  0x70   : > { %1678 = shalt.err (!%p1675_p3)
}
  0x71   : > { %s1679_s17 = scalar_lea.vmem %s364_s1, 1024  ;;  %p2530_p12 = pmov %p2529_p11 }
  0x72   : > { %p1680_p5 = scmp.ne.s32.totalorder %s364_s1, %s1679_s17  ;;  %p1687_p10 = scmp.lt.s32.totalorder %s364_s1, %s364_s1 }
  0x73   : > { %p1688_p9 = scmp.lt.s32.totalorder %s1679_s17, %s1679_s17 }
  0x74   : > { %p1682_p1 = pnand %p1680_p5, %p2530_p12 }
  0x75   : > { %p1689_p0 = por %p1688_p9, %p1687_p10 }
  0x76   : > { %p1683_p6 = pneg %p1682_p1 }
  0x78   : > { %p1690_p4 = pnand %p1689_p0, %p1683_p6 }
  0x7a   : > { %1693 = shalt.err (!%p1690_p4)
}
  0x7b   : > { %s2531_s5 = smov 4   ;;  %s2532_s9 = smov 64  }
  0x7c   : > { %1504 = dma.hbm_to_vmem [thread:$0]  (!%p2528_p8), %s2473_s8, 1024, %s364_s1, [#allocation12], %s2532_s9, %s2532_s9, %s2531_s5  }
  0x7d   : > { %s2533_s26 = sshll.u32 %s1898_s20, 6  ;;  %s2534_s19 = sshll.u32 %s2078_s13, 2 }
  0x7e   : > { %s2167_s16 = scalar_lea.hbm %s2465_s0, %s2533_s26  ;;  %s384_s28 = scalar_lea.vmem [#allocation2], %s2534_s19 }
  0x7f   : > { %s391_s14 = sshll.u32 %s384_s28, 4  ;;  %s1360_s22 = sshll.u32 %s1898_s20, 10  ;;  %s2171_s14 = int_to_ptr.vmem [resolvable:$true] %s391_s14 }
  0x80   : > { %s381_s17 = scalar_lea.sflag [#allocation3], %s2078_s13  ;;  %s1694_s10 = scalar_lea.hbm %s2167_s16, 64 }
  0x81   : > { %p1695_p9 = scmp.ne.s32.totalorder %s2167_s16, %s1694_s10  ;;  %p2535_p0 = scmp.ne.s32.totalorder %s2525_s24, 0 }
  0x82   : > { %s1699_s26 = scalar_lea.hbm %s2465_s0, 128  ;;  %p1700_p13 = scmp.lt.u32.totalorder %s2167_s16, %s2465_s0 }
  0x83   : > { %p1697_p8 = pnand %p1695_p9, %p2535_p0  ;;  %p1701_p7 = scmp.lt.u32.totalorder %s1699_s26, %s1694_s10 }
  0x84   : > { %p1703_p3 = scmp.lt.u32.totalorder %s1694_s10, %s2167_s16 }
  0x85   : > { %p1698_p11 = pneg %p1697_p8  ;;  %p1702_p2 = por %p1701_p7, %p1700_p13 }
  0x87   : > { %p1704_p5 = por %p1703_p3, %p1702_p2 }
  0x89   : > { %p1705_p12 = pnand %p1704_p5, %p1698_p11 }
  0x8b   : > { %1708 = shalt.err (!%p1705_p12)
}
  0x8c   : > { %s1709_s13 = scalar_lea.vmem %s2171_s14, 64  ;;  %s1905_s19 = smov [#allocation2]  }
  0x8d   : > { %p1710_p1 = scmp.ne.s32.totalorder %s2171_s14, %s1709_s13  ;;  %s1714_s28 = sshll.u32 %s1905_s19, 4  ;;  %s1715_s28 = int_to_ptr.vmem [resolvable:$false] %s1714_s28 }
  0x8e   : > { %s1716_s1 = scalar_lea.vmem %s1715_s28, 128  ;;  %p1717_p4 = scmp.lt.s32.totalorder %s2171_s14, %s1715_s28 }
  0x8f   : > { %p1712_p6 = pnand %p1710_p1, %p2535_p0  ;;  %p1718_p9 = scmp.lt.s32.totalorder %s1716_s1, %s1709_s13 }
  0x91   : > { %p1713_p10 = pneg %p1712_p6  ;;  %p1719_p8 = por %p1718_p9, %p1717_p4 }
  0x93   : > { %p1720_p13 = pnand %p1719_p8, %p1713_p10 }
  0x95   : > { %1723 = shalt.err (!%p1720_p13)
}
  0x96   : > { %p2536_p11 = scmp.ne.s32.totalorder %s2523_s12, 0  ;;  %s2201_s26 = scalar_lea.hbm %s2467_s2, %s1360_s22 }
  0x97   : > { %s2208_s13 = scalar_lea.hbm %s2468_s3, %s1360_s22  ;;  %s1724_s19 = scalar_lea.hbm %s2201_s26, 1024 }
  0x98   : > { %1508 = dma.hbm_to_vmem [thread:$0]  (!%p2536_p11), %s2167_s16, 64, %s2171_s14, %s381_s17  }
  0x99   : > { %p1725_p7 = scmp.ne.s32.totalorder %s2201_s26, %s1724_s19  ;;  %s1729_s17 = scalar_lea.hbm %s2467_s2, 2048 }
  0x9a   : > { %p1730_p5 = scmp.lt.u32.totalorder %s2201_s26, %s2467_s2  ;;  %p1731_p12 = scmp.lt.u32.totalorder %s1729_s17, %s1724_s19 }
  0x9b   : > { %p1727_p2 = pnand %p1725_p7, %p2535_p0  ;;  %p1733_p6 = scmp.lt.u32.totalorder %s1724_s19, %s2201_s26 }
  0x9c   : > { %p1732_p1 = por %p1731_p12, %p1730_p5 }
  0x9d   : > { %p1728_p3 = pneg %p1727_p2 }
  0x9e   : > { %p1734_p10 = por %p1733_p6, %p1732_p1 }
  0xa0   : > { %p1735_p4 = pnand %p1734_p10, %p1728_p3 }
  0xa2   : > { %1738 = shalt.err (!%p1735_p4)
}
  0xa3   : > { %s1739_s22 = scalar_lea.vmem %s2133_s6, 1024  ;;  %s1906_s10 = smov [#allocation7]  }
  0xa4   : > { %p1740_p9 = scmp.ne.s32.totalorder %s2133_s6, %s1739_s22  ;;  %s1744_s11 = sshll.u32 %s1906_s10, 4  ;;  %s1745_s11 = int_to_ptr.vmem [resolvable:$false] %s1744_s11 }
  0xa5   : > { %s1746_s15 = scalar_lea.vmem %s1745_s11, 2048  ;;  %p1747_p7 = scmp.lt.s32.totalorder %s2133_s6, %s1745_s11 }
  0xa6   : > { %p1742_p8 = pnand %p1740_p9, %p2535_p0  ;;  %p1748_p2 = scmp.lt.s32.totalorder %s1746_s15, %s1739_s22 }
  0xa8   : > { %p1743_p13 = pneg %p1742_p8  ;;  %p1749_p5 = por %p1748_p2, %p1747_p7 }
  0xaa   : > { %p1750_p12 = pnand %p1749_p5, %p1743_p13 }
  0xac   : > { %1753 = shalt.err (!%p1750_p12)
}
  0xad   : > { %1514 = dma.hbm_to_vmem [thread:$0]  (!%p2536_p11), %s2201_s26, 1024, %s2133_s6, %s2101_s29, %s2532_s9, %s2532_s9, %s2531_s5  }
  0xae   : > { %s2537_s27 = sand.u32 1, %s1898_s20   ;;  %s1754_s16 = scalar_lea.hbm %s2208_s13, 1024 }
  0xaf   : > { %s2237_s19 = scalar_lea.sflag [#allocation9], %s2537_s27  ;;  %p1755_p3 = scmp.ne.s32.totalorder %s2208_s13, %s1754_s16 }
  0xb0   : > { %s1759_s28 = scalar_lea.hbm %s2468_s3, 2048  ;;  %p1760_p10 = scmp.lt.u32.totalorder %s2208_s13, %s2468_s3 }
  0xb1   : > { %p1757_p1 = pnand %p1755_p3, %p2535_p0  ;;  %p1761_p4 = scmp.lt.u32.totalorder %s1759_s28, %s1754_s16 }
  0xb2   : > { %p1763_p8 = scmp.lt.u32.totalorder %s1754_s16, %s2208_s13 }
  0xb3   : > { %p1758_p6 = pneg %p1757_p1  ;;  %p1762_p9 = por %p1761_p4, %p1760_p10 }
  0xb5   : > { %p1764_p13 = por %p1763_p8, %p1762_p9 }
  0xb7   : > { %p1765_p7 = pnand %p1764_p13, %p1758_p6 }
  0xb9   : > { %1768 = shalt.err (!%p1765_p7)
}
  0xba   : > { %s1769_s29 = scalar_lea.vmem %s2137_s30, 1024  ;;  %s1907_s6 = smov [#allocation8]  }
  0xbb   : > { %p1770_p2 = scmp.ne.s32.totalorder %s2137_s30, %s1769_s29  ;;  %s1774_s26 = sshll.u32 %s1907_s6, 4  ;;  %s1775_s26 = int_to_ptr.vmem [resolvable:$false] %s1774_s26 }
  0xbc   : > { %s1776_s10 = scalar_lea.vmem %s1775_s26, 2048  ;;  %p1777_p3 = scmp.lt.s32.totalorder %s2137_s30, %s1775_s26 }
  0xbd   : > { %p1772_p5 = pnand %p1770_p2, %p2535_p0  ;;  %p1778_p1 = scmp.lt.s32.totalorder %s1776_s10, %s1769_s29 }
  0xbf   : > { %p1773_p12 = pneg %p1772_p5  ;;  %p1779_p10 = por %p1778_p1, %p1777_p3 }
  0xc1   : > { %p1780_p4 = pnand %p1779_p10, %p1773_p12 }
  0xc3   : > { %1783 = shalt.err (!%p1780_p4)
}
  0xc4   : > { %1517 = dma.hbm_to_vmem [thread:$0]  (!%p2536_p11), %s2208_s13, 1024, %s2137_s30, %s2237_s19, %s2532_s9, %s2532_s9, %s2531_s5  }
  0xc5   : > { %p2538_p0 = scmp.ne.s32.totalorder %s2515_s25, 0 }
  0xc6   : > { %s2267_s24 = sand.u32 (!%p2538_p0), 1, %s1890_s18   ;;  %p2539_p6 = scmp.ne.s32.totalorder (!%p2538_p0), %s2512_s23, 0 }
  0xc7   : > { %472 = sbr.rel (%p2538_p0) target bundleno = 1449 (0x5a9), region = 60  ;;  %s1311_s11 = sshll.u32 (!%p2538_p0), %s2267_s24, 2 }
  0xc8   : > { %s475_s15 = scalar_lea.sflag (!%p2538_p0), [#allocation3], %s2267_s24  ;;  %s2271_s27 = scalar_lea.vmem (!%p2538_p0), [#allocation2], %s1311_s11 }
  0xce   : > { %1857 = dma.done.wait (%p2539_p6), %s475_s15, 64  }
  0xcf   : > { %1859 = vsyncadd (%p2539_p6), %s475_s15, 4294967232  ;;  %s483_s12 = sand.u32 1, %s1994_s21   ;;  %s2278_s30 = scalar_lea.vmem [#allocation5], %s1311_s11 }
  0xd0   : > { %s484_s25 = scalar_lea.sflag [#allocation6], %s483_s12 }
  0xd1   : > { %1861 = dma.done.wait (%p2539_p6), %s484_s25, 1088  }
  0xd2   : > { %1863 = vsyncadd (%p2539_p6), %s484_s25, 4294966208  ;;  %s1313_s5 = sshll.u32 %s2267_s24, 6  ;;  %s502_s13 = scalar_lea.sflag [#allocation9], %s483_s12 }
  0xd3   : > { %s2285_s9 = scalar_lea.vmem [#allocation7], %s1313_s5  ;;  %s2287_s19 = scalar_lea.vmem [#allocation8], %s1313_s5 }
  0xd4   : > { %1865 = dma.done.wait (%p2539_p6), %s502_s13, 1024  }
  0xd5   : > { %1867 = vsyncadd (%p2539_p6), %s502_s13, 4294966272  ;;  %p2540_p11 = scmp.eq.s32.totalorder %s1994_s21, 0 }
  0xd7   : > { %1869 = dma.done.wait (%p2540_p11), [#allocation9], 1024   ;;  %p2541_p9 = pmov %p2540_p11 }
  0xd9   : > { %1871 = vsyncadd (%p2541_p9), [#allocation9], 4294966272  ;;  %p2542_p8 = pmov %p2541_p9 }
  0xdb   : > { %1873 = dma.done.wait (%p2542_p8), [#allocation12], 1024   ;;  %p2543_p13 = pmov %p2542_p8 }
  0xdc   : > { %v1908_v0 = vmov 0.0   ;;  %vm1909_vm0 = vmmov 0   ;;  %v1572_v1 = vld [vmem:[#allocation10] sm:$0xff]   ;;  %v1573_v2 = vld [vmem:[#allocation10 + $0x8] sm:$0xff]   ;;  %v1574_v3 = vld [vmem:[#allocation10 + $0x10] sm:$0xff]   ;;  %v1910_v29 = vmov 0   ;;  %v809_v30 = vlaneseq }
  0xdd   : > { %1875 = vsyncadd (%p2543_p13), [#allocation12], 4294966272  ;;  %1398 = vmatprep.subr.bf16.mxu0 %v1908_v0  ;;  %1414 = vmatprep.mubr.msk.bf16.mxu0 %vm1909_vm0, %v1908_v0  ;;  %v1580_v4 = vld [vmem:[%s2285_s9] sm:$0xff]   ;;  %v1575_v5 = vld [vmem:[#allocation10 + $0x18] sm:$0xff]   ;;  %p578_p7 = scmp.lt.s32.totalorder %s1994_s21, 1  ;;  %s1317_s22 = sshll.u32 %s2267_s24, 3 }
  0xde   : > { %1418 = vmatprep.subr.bf16.mxu1 %v1908_v0  ;;  %1434 = vmatprep.mubr.msk.bf16.mxu1 %vm1909_vm0, %v1908_v0  ;;  %v1576_v6 = vld [vmem:[#allocation10 + $0x20] sm:$0xff]   ;;  %v1581_v7 = vld [vmem:[%s2285_s9 + $0x8] sm:$0xff]   ;;  %v1578_v9 = vld [vmem:[#allocation10 + $0x30] sm:$0xff]   ;;  %v810_v32 = vshrl.u32 %v809_v30, 7  ;;  %s2367_s29 = scalar_lea.vmem [#allocation14], %s1317_s22  ;;  %s2544_s10 = sld [smem:[#allocation30_spill]] }
  0xdf   : > { %1399 = vmatpush3.bf16.msra.mxu0 %v1572_v1  ;;  %1419 = vmatpush3.bf16.xpose.msra.mxu1 %v1580_v4  ;;  %v1577_v8 = vld [vmem:[#allocation10 + $0x28] sm:$0xff]   ;;  %v1582_v10 = vld [vmem:[%s2285_s9 + $0x10] sm:$0xff]   ;;  %v1579_v11 = vld [vmem:[#allocation10 + $0x38] sm:$0xff]   ;;  %s2342_s14 = scalar_select %p578_p7, %s1994_s21, 1 }
  0xe0   : > { %1400 = vmatprep.subr.bf16.mxu0 %v1908_v0  ;;  %1420 = vmatprep.subr.bf16.mxu1 %v1908_v0  ;;  %v2321_v12 = vld [vmem:[%s2271_s27] sm:$0xf]  ;;  %v1583_v13 = vld [vmem:[%s2285_s9 + $0x18] sm:$0xff]   ;;  %v1584_v14 = vld [vmem:[%s2285_s9 + $0x20] sm:$0xff]   ;;  %v811_v33 = vsub.s32 0, %v810_v32  ;;  %s2545_s15 = sld [smem:[#allocation28_spill]] }
  0xe1   : > { %v1585_v15 = vld [vmem:[%s2285_s9 + $0x28] sm:$0xff]   ;;  %v1586_v16 = vld [vmem:[%s2285_s9 + $0x30] sm:$0xff]   ;;  %v1587_v17 = vld [vmem:[%s2285_s9 + $0x38] sm:$0xff]   ;;  %1570 = vset.pattern.permute.xlu1 %v1910_v29  ;;  %1571 = vset.pattern.permute.xlu0 %v1910_v29  ;;  %s580_s1 = scalar_lea.vmem %s2469_s4, %s2342_s14  ;;  %s1356_s27 = sshll.u32 %s1994_s21, 7 }
  0xe2   : > { %v697_v18 = vld [vmem:[%s2278_s30] sm:$0xf]  ;;  %v1319_v19 = vld [vmem:[%s2472_s7] ss:$0 sm:$0xff]  ;;  %v1588_v41 = vld [vmem:[%s2287_s19] sm:$0xff]   ;;  %s2546_s30 = sld [smem:[#allocation34_spill]] }
  0xe3   : > { %1401 = vmatpush3.bf16.msra.mxu0 %v1573_v2  ;;  %v698_v20 = vunpack.c.l.bf16 %v697_v18  ;;  %v806_v31 = vld [vmem:[%s580_s1] sm:$0x1]  ;;  %v1589_v42 = vld [vmem:[%s2287_s19 + $0x8] sm:$0xff]   ;;  %v1591_v44 = vld [vmem:[%s2287_s19 + $0x18] sm:$0xff]   ;;  %s1090_s9 = sshll.u32 %s2367_s29, 4  ;;  %s1064_s13 = scalar_lea.sflag [#allocation15], %s2267_s24  ;;  %s1091_s9 = int_to_ptr.vmem [resolvable:$true] %s1090_s9 }
  0xe4   : > { %1402 = vmatprep.subr.bf16.mxu0 %v1908_v0  ;;  %vm807_vm1 = vcmp.gt.f32.partialorder %v806_v31, 0.5  ;;  %v1590_v43 = vld [vmem:[%s2287_s19 + $0x10] sm:$0xff]   ;;  %v1592_v49 = vld [vmem:[%s2287_s19 + $0x20] sm:$0xff]   ;;  %v1593_v50 = vld [vmem:[%s2287_s19 + $0x28] sm:$0xff]   ;;  %s583_s11 = scalar_lea.vmem %s2544_s10, %s2342_s14  ;;  %s1911_s23 = smov [#allocation14]  }
  0xe5   : > { %v808_v34 = vsel %vm807_vm1, 1, %v1910_v29  ;;  %v1594_v51 = vld [vmem:[%s2287_s19 + $0x30] sm:$0xff]   ;;  %v1595_v52 = vld [vmem:[%s2287_s19 + $0x38] sm:$0xff]   ;;  %v1596_v56 = vld [vmem:[#allocation11] sm:$0xff]   ;;  %s1784_s19 = scalar_lea.vmem %s1091_s9, 128  ;;  %s1788_s16 = sshll.u32 %s1911_s23, 4  ;;  %s1789_s16 = int_to_ptr.vmem [resolvable:$false] %s1788_s16 }
  0xe6   : > { %v812_v35 = vrot.slane %v808_v34, %v811_v33  ;;  %v1597_v58 = vld [vmem:[#allocation11 + $0x8] sm:$0xff]   ;;  %v1598_v59 = vld [vmem:[#allocation11 + $0x10] sm:$0xff]   ;;  %v1599_v60 = vld [vmem:[#allocation11 + $0x18] sm:$0xff]   ;;  %p1785_p2 = scmp.ne.s32.totalorder %s1091_s9, %s1784_s19  ;;  %p2547_p5 = scmp.ne.s32.totalorder %s2545_s15, 0 }
  0xe7   : > { %1403 = vmatpush3.bf16.msra.mxu0 %v1574_v3  ;;  %1421 = vmatpush3.bf16.xpose.msra.mxu1 %v1581_v7  ;;  %v1600_v61 = vld [vmem:[#allocation11 + $0x20] sm:$0xff]   ;;  %v1601_v62 = vld [vmem:[#allocation11 + $0x28] sm:$0xff]   ;;  %v1602_v63 = vld [vmem:[#allocation11 + $0x30] sm:$0xff]   ;;  %s1790_s14 = scalar_lea.vmem %s1789_s16, 256  ;;  %p1791_p1 = scmp.lt.s32.totalorder %s1091_s9, %s1789_s16 }
  0xe8   : > { %1404 = vmatprep.subr.bf16.mxu0 %v1908_v0  ;;  %1422 = vmatprep.subr.bf16.mxu1 %v1908_v0  ;;  %vm813_vm2 = vcmp.eq.s32.totalorder %v812_v35, 1  ;;  %v1603_v1 = vld [vmem:[#allocation11 + $0x38] sm:$0xff]   ;;  %v1352_v2 = vld [vmem:[%s583_s11] ss:$0 sm:$0xff]  ;;  %s2389_s5 = scalar_lea.hbm %s2546_s30, %s1356_s27  ;;  %p1786_p12 = pnand %p1785_p2, %p2547_p5 }
  0xe9   : > { %1042 = vperm.xlu1 %1570, %v1352_v2   ;;  %p1792_p10 = scmp.lt.s32.totalorder %s1790_s14, %s1784_s19 }
  0xea   : > { %p1787_p3 = pneg %p1786_p12 }
  0xeb   : > { %1405 = vmatpush3.bf16.msra.mxu0 %v1575_v5  ;;  %p1793_p4 = por %p1792_p10, %p1791_p1 }
  0xec   : > { %1406 = vmatprep.subr.bf16.mxu0 %v1908_v0 }
  0xed   : > { %p1794_p0 = pnand %p1793_p4, %p1787_p3 }
  0xef   : > { %1407 = vmatpush3.bf16.msra.mxu0 %v1576_v6  ;;  %1423 = vmatpush3.bf16.xpose.msra.mxu1 %v1582_v10 }
  0xf0   : > { %1408 = vmatprep.subr.bf16.mxu0 %v1908_v0  ;;  %1424 = vmatprep.subr.bf16.mxu1 %v1908_v0 }
  0xf3   : > { %1409 = vmatpush3.bf16.msra.mxu0 %v1577_v8 }
  0xf4   : > { %1410 = vmatprep.subr.bf16.mxu0 %v1908_v0 }
  0xf7   : > { %1411 = vmatpush3.bf16.msra.mxu0 %v1578_v9  ;;  %1425 = vmatpush3.bf16.xpose.msra.mxu1 %v1583_v13 }
  0xf8   : > { %1412 = vmatprep.subr.bf16.mxu0 %v1908_v0  ;;  %1426 = vmatprep.subr.bf16.mxu1 %v1908_v0 }
  0xfb   : > { %1413 = vmatpush3.bf16.msra.mxu0 %v1579_v11 }
  0xfc   : > { %1438 = vmatprep.subr.bf16.mxu0 %v1908_v0 }
  0xfe   : > { %1415 = vmatmul.mubr.bf16.vlgmr.msra.gmra.mrb[0].mxu0 %v2321_v12 }
  0xff   : > { %1454 = vmatprep.mubr.msk.bf16.mxu0 %vm1909_vm0, %v1908_v0  ;;  %1427 = vmatpush3.bf16.xpose.msra.mxu1 %v1584_v14 }
 0x100   : > { %1428 = vmatprep.subr.bf16.mxu1 %v1908_v0  ;;  %1439 = vmatpush3.bf16.msra.mxu0 %v1588_v41 }
 0x101   : > { %1440 = vmatprep.subr.bf16.mxu0 %v1908_v0 }
 0x104   : > { %1441 = vmatpush3.bf16.msra.mxu0 %v1589_v42 }
 0x105   : > { %1442 = vmatprep.subr.bf16.mxu0 %v1908_v0 }
 0x107   : > { %1429 = vmatpush3.bf16.xpose.msra.mxu1 %v1585_v15 }
 0x108   : > { %1430 = vmatprep.subr.bf16.mxu1 %v1908_v0  ;;  %1443 = vmatpush3.bf16.msra.mxu0 %v1590_v43 }
 0x109   : > { %1444 = vmatprep.subr.bf16.mxu0 %v1908_v0 }
 0x10c   : > { %1445 = vmatpush3.bf16.msra.mxu0 %v1591_v44 }
 0x10d   : > { %1446 = vmatprep.subr.bf16.mxu0 %v1908_v0 }
 0x10f   : > { %1431 = vmatpush3.bf16.xpose.msra.mxu1 %v1586_v16 }
 0x110   : > { %1432 = vmatprep.subr.bf16.mxu1 %v1908_v0  ;;  %1447 = vmatpush3.bf16.msra.mxu0 %v1592_v49 }
 0x111   : > { %1448 = vmatprep.subr.bf16.mxu0 %v1908_v0 }
 0x114   : > { %1449 = vmatpush3.bf16.msra.mxu0 %v1593_v50 }
 0x115   : > { %1450 = vmatprep.subr.bf16.mxu0 %v1908_v0 }
 0x117   : > { %1433 = vmatpush3.bf16.xpose.msra.mxu1 %v1587_v17 }
 0x118   : > { %1451 = vmatpush3.bf16.msra.mxu0 %v1594_v51 }
 0x119   : > { %1452 = vmatprep.subr.bf16.mxu0 %v1908_v0 }
 0x11c   : > { %1453 = vmatpush3.bf16.msra.mxu0 %v1595_v52 }
 0x11d   : > { %1458 = vmatprep.subr.bf16.mxu0 %v1908_v0 }
 0x1d1   : > { %v691_v21 = vpop.f32.mrb[0].mxu0 }
 0x1d2   : > { %v692_v22 = vadd.f32 %v1319_v19, %v691_v21  ;;  %v1416_v23 = vpop.f32.mrb[1].mxu0 }
 0x1d3   : > { %v694_v24 = vpop.f32.mrb[2].mxu0 }
 0x1d4   : > { %v699_v25 = vadd.f32 %v698_v20, %v692_v22  ;;  %v1417_v26 = vpop.f32.mrb[3].mxu0 }
 0x1d6   : > { %v700_v27 = vmul.f32 0.70710677, %v699_v25 }
 0x1d8   : > { %v701_v28 = vpack.c.bf16 %v700_v27, %v700_v27 }
 0x1da   : > { %1435 = vmatmul.mubr.bf16.vlgmr.msra.gmra.mrb[0].mxu1 %v701_v28 }
 0x2ad   : > { %v800_v36 = vpop.f32.mrb[0].mxu1 }
 0x2ae   : > { %v1436_v37 = vpop.f32.mrb[1].mxu1  ;;  %v814_v38 = vsel %vm813_vm2, %v800_v36, -1e+30 }
 0x2af   : > { %815 = vmax.xlane.f32.xlu0 %v814_v38  ;;  %v803_v39 = vpop.f32.mrb[2].mxu1 }
 0x2b0   : > { %v1437_v40 = vpop.f32.mrb[3].mxu1 }
 0x33c   : > { %v816_v45 = vpop.xlane.xlu0 %815 }
 0x33d   : > { %v817_v46 = vsub.f32 %v814_v38, %v816_v45 }
 0x33f   : > { %v818_v47 = vmul.f32 1.442695, %v817_v46 }
 0x341   : > { %1604 = vpow2.f32 %v818_v47 }
 0x34b   : > { %v1605_v48 = vpop.eup %1604 }
 0x34c   : > { %820 = vadd.xlane.f32.xlu0 %v1605_v48 }
 0x3d9   : > { %v821_v53 = vpop.xlane.xlu0 %820 }
 0x3da   : > { %1606 = vrcp.f32 %v821_v53 }
 0x3e4   : > { %v1607_v54 = vpop.eup %1606 }
 0x3e5   : > { %v823_v55 = vmul.f32 %v1607_v54, %v1605_v48 }
 0x3e7   : > { %v825_v57 = vpack.c.bf16 %v823_v55, %v823_v55  ;;  %824 = vst [vmem:[%s2367_s29] sm:$0xff] %v823_v55 }
 0x3e9   : > { %1455 = vmatmul.mubr.bf16.vlgmr.msra.gmra.mrb[4].mxu0 %v825_v57 }
 0x3ea   : > { %1459 = vmatpush3.bf16.msra.mxu0 %v1596_v56  ;;  %1474 = vmatprep.mubr.msk.bf16.mxu0 %vm1909_vm0, %v1908_v0 }
 0x3eb   : > { %1460 = vmatprep.subr.bf16.mxu0 %v1908_v0 }
 0x3ee   : > { %1461 = vmatpush3.bf16.msra.mxu0 %v1597_v58 }
 0x3ef   : > { %1462 = vmatprep.subr.bf16.mxu0 %v1908_v0 }
 0x3f2   : > { %1463 = vmatpush3.bf16.msra.mxu0 %v1598_v59 }
 0x3f3   : > { %1464 = vmatprep.subr.bf16.mxu0 %v1908_v0 }
 0x3f6   : > { %1465 = vmatpush3.bf16.msra.mxu0 %v1599_v60 }
 0x3f7   : > { %1466 = vmatprep.subr.bf16.mxu0 %v1908_v0 }
 0x3fa   : > { %1467 = vmatpush3.bf16.msra.mxu0 %v1600_v61 }
 0x3fb   : > { %1468 = vmatprep.subr.bf16.mxu0 %v1908_v0 }
 0x3fe   : > { %1469 = vmatpush3.bf16.msra.mxu0 %v1601_v62 }
 0x3ff   : > { %1470 = vmatprep.subr.bf16.mxu0 %v1908_v0 }
 0x402   : > { %1471 = vmatpush3.bf16.msra.mxu0 %v1602_v63 }
 0x403   : > { %1472 = vmatprep.subr.bf16.mxu0 %v1908_v0 }
 0x406   : > { %1473 = vmatpush3.bf16.msra.mxu0 %v1603_v1 }
 0x4bc   : > { %v924_v3 = vpop.f32.mrb[4].mxu0 }
 0x4bd   : > { %v930_v4 = vpack.c.bf16 %v924_v3, %v924_v3  ;;  %v1456_v5 = vpop.f32.mrb[5].mxu0 }
 0x4be   : > { %v927_v6 = vpop.f32.mrb[6].mxu0 }
 0x4bf   : > { %v1457_v7 = vpop.f32.mrb[7].mxu0  ;;  %1475 = vmatmul.mubr.bf16.vlgmr.msra.gmra.mrb[8].mxu0 %v930_v4 }
 0x4c0   : > { %1797 = shalt.err (!%p1794_p0)
}
 0x4c1   : > { %s1798_s17 = scalar_lea.hbm %s2389_s5, 128  ;;  %s1802_s29 = scalar_lea.hbm %s2546_s30, 256 }
 0x4c2   : > { %p1799_p6 = scmp.ne.s32.totalorder %s2389_s5, %s1798_s17  ;;  %p1803_p8 = scmp.lt.u32.totalorder %s2389_s5, %s2546_s30 }
 0x4c3   : > { %p1804_p13 = scmp.lt.u32.totalorder %s1802_s29, %s1798_s17  ;;  %p1806_p2 = scmp.lt.u32.totalorder %s1798_s17, %s2389_s5 }
 0x4c4   : > { %p1800_p11 = pnand %p1799_p6, %p2547_p5 }
 0x4c5   : > { %p1805_p7 = por %p1804_p13, %p1803_p8 }
 0x4c6   : > { %p1801_p9 = pneg %p1800_p11 }
 0x4c7   : > { %p1807_p12 = por %p1806_p2, %p1805_p7 }
 0x4c9   : > { %p1808_p3 = pnand %p1807_p12, %p1801_p9 }
 0x4cb   : > { %1811 = shalt.err (!%p1808_p3)
}
 0x4cc   : > { %1495 = dma.vmem_to_hbm [thread:$0]  (%p2547_p5), %s1091_s9, 128, %s2389_s5, %s1064_s13   ;;  %v1043_v0 = vpop.permute.xlu1 %1042  ;;  %v1054_v10 = vunpack.c.l.bf16 %v2321_v12 }
 0x4cd   : > { %s2548_s12 = sld [smem:[#allocation32_spill]]  ;;  %s570_s25 = scalar_lea.vmem [#allocation13], %s1317_s22 }
 0x4ce   : > { %s1077_s19 = sshll.u32 %s570_s25, 4  ;;  %s2549_s13 = sld [smem:[#allocation33_spill]]  ;;  %s2423_s19 = int_to_ptr.vmem [resolvable:$true] %s1077_s19 }
 0x4cf   : > { %s1059_s16 = scalar_lea.sflag [#allocation4], %s2267_s24  ;;  %s1812_s14 = scalar_lea.vmem %s2423_s19, 128 }
 0x4d0   : > { %p1813_p1 = scmp.ne.s32.totalorder %s2423_s19, %s1812_s14  ;;  %s1912_s22 = smov [#allocation13]  }
 0x4d1   : > { %s1816_s17 = sshll.u32 %s1912_s22, 4  ;;  %s1817_s17 = int_to_ptr.vmem [resolvable:$false] %s1816_s17 }
 0x4d2   : > { %p1814_p10 = pnand %p1813_p1, %p2547_p5  ;;  %s1818_s21 = scalar_lea.vmem %s1817_s17, 256 }
 0x4d3   : > { %v1353_v9 = vld [vmem:[%s2548_s12] ss:$0 sm:$0xff]  ;;  %p1819_p0 = scmp.lt.s32.totalorder %s2423_s19, %s1817_s17  ;;  %p1820_p6 = scmp.lt.s32.totalorder %s1818_s21, %s1812_s14 }
 0x4d4   : > { %s2421_s23 = scalar_lea.hbm %s2549_s13, %s1356_s27  ;;  %p1815_p4 = pneg %p1814_p10 }
 0x4d5   : > { %p1821_p11 = por %p1820_p6, %p1819_p0 }
 0x4d7   : > { %p1822_p9 = pnand %p1821_p11, %p1815_p4 }
 0x592   : > { %v1029_v8 = vpop.f32.mrb[8].mxu0 }
 0x593   : > { %v1045_v11 = vmul.f32 %v1043_v0, %v1029_v8  ;;  %v1476_v13 = vpop.f32.mrb[9].mxu0 }
 0x594   : > { %v1032_v14 = vpop.f32.mrb[10].mxu0 }
 0x595   : > { %v1053_v15 = vadd.f32 %v1353_v9, %v1045_v11  ;;  %v1477_v16 = vpop.f32.mrb[11].mxu0 }
 0x597   : > { %v1055_v17 = vadd.f32 %v1054_v10, %v1053_v15 }
 0x599   : > { %v1056_v18 = vmul.f32 0.70710677, %v1055_v17 }
 0x59b   : > { %1057 = vst [vmem:[%s570_s25] sm:$0xff] %v1056_v18 }
 0x59c   : > { %1825 = shalt.err (!%p1822_p9)
}
 0x59d   : > { %s1826_s24 = scalar_lea.hbm %s2421_s23, 128  ;;  %s1830_s1 = scalar_lea.hbm %s2549_s13, 256 }
 0x59e   : > { %p1827_p8 = scmp.ne.s32.totalorder %s2421_s23, %s1826_s24  ;;  %p1831_p2 = scmp.lt.u32.totalorder %s2421_s23, %s2549_s13 }
 0x59f   : > { %p1832_p12 = scmp.lt.u32.totalorder %s1830_s1, %s1826_s24  ;;  %p1834_p1 = scmp.lt.u32.totalorder %s1826_s24, %s2421_s23 }
 0x5a0   : > { %p1828_p13 = pnand %p1827_p8, %p2547_p5 }
 0x5a1   : > { %p1833_p3 = por %p1832_p12, %p1831_p2 }
 0x5a2   : > { %p1829_p7 = pneg %p1828_p13 }
 0x5a3   : > { %p1835_p10 = por %p1834_p1, %p1833_p3 }
 0x5a5   : > { %p1836_p4 = pnand %p1835_p10, %p1829_p7 }
 0x5a7   : > { %1839 = shalt.err (!%p1836_p4)
}
 0x5a8   : > { %1494 = dma.vmem_to_hbm [thread:$0]  (%p2547_p5), %s2423_s19, 128, %s2421_s23, %s1059_s16  }
 0x5a9 PF: > { %s2550_s26 = sld [smem:[#allocation23_spill]]  ;;  %s2551_s10 = sld [smem:[#allocation25_spill]] }
 0x5aa   : > { %p2553_p6 = scmp.ge.s32.totalorder %s1898_s20, 2 }
 0x5af   : > { %s1102_s11 = sand.u32 1, %s2550_s26   ;;  %p2552_p0 = scmp.ne.s32.totalorder %s2551_s10, 0 }
 0x5b0   : > { %s1103_s12 = scalar_lea.sflag [#allocation4], %s1102_s11 }
 0x5b1   : > { %p1519_p11 = pnand %p2553_p6, %p2552_p0 }
 0x5b3   : > { %1877 = dma.done.wait (!%p1519_p11), %s1103_s12, 128  }
 0x5b4   : > { %1879 = vsyncadd (!%p1519_p11), %s1103_s12, 4294967168  ;;  %s1112_s25 = scalar_lea.sflag [#allocation15], %s1102_s11 }
 0x5b5   : > { %1881 = dma.done.wait (!%p1519_p11), %s1112_s25, 128  }
 0x5b6   : > { %1883 = vsyncadd (!%p1519_p11), %s1112_s25, 4294967168  ;;  %s2554_s20 = sld [smem:[#allocation26_spill]]  ;;  %s2555_s15 = sld [smem:[#allocation24_spill]] }
 0x5b7   : > { %s2556_s19 = sld [smem:[#allocation27_spill]]  ;;  %s2557_s17 = smov %s1890_s18 }
 0x5bc   : > { %p35_p5 = scmp.ge.s32.totalorder %s2554_s20, 4   ;;  %s2558_s18 = smov %s2555_s15 }
 0x5be   :  { %37 = sbr.rel (!%p35_p5) target bundleno = 19 (0x13), region = 173 }
 0x5c5   :  { %1117 = vsyncpa [#allocation3], 1 }
 0x5c6   :  { %1119 = vsyncpa [#allocation3 + $0x1], 1 }
 0x5c7   :  { %1120 = vsyncpa [#allocation6], 1 }
 0x5c8   :  { %1122 = vsyncpa [#allocation6 + $0x1], 1 }
 0x5c9   :  { %1123 = vsyncpa [#allocation9], 1 }
 0x5ca   :  { %1125 = vsyncpa [#allocation9 + $0x1], 1 }
 0x5cb   :  { %1126 = vsyncpa [#allocation12], 1 }
 0x5cc   :  { %1127 = vsyncpa [#allocation4], 1 }
 0x5cd   :  { %1129 = vsyncpa [#allocation4 + $0x1], 1 }
 0x5ce   :  { %1130 = vsyncpa [#allocation15], 1 }
 0x5cf   :  { %1132 = vsyncpa [#allocation15 + $0x1], 1 }

</bundles_post_ra>
